<compile_context>
chip_gen: v5e
topology: v5e:2x2
jax: 0.10.0
libtpu: 0.0.40
codegen_flags: <defaults>
</compile_context>

<pallas_src>
import jax
import jax.numpy as jnp
from jax.experimental import pallas as pl
from jax.experimental.pallas import tpu as pltpu


def _round_up(n: int, m: int) -> int:
    return ((n + m - 1) // m) * m


def toy_mlp_kernel(x_ref, w1_ref, b1_ref, w2_ref, b2_ref, o_ref):
    # x_ref / w1_ref / w2_ref are bf16 -> native MXU path, f32 accumulation.
    # Biases are (1, N) f32 blocks broadcast by the add (no explicit broadcast_to).
    h = jnp.dot(x_ref[...], w1_ref[...], preferred_element_type=jnp.float32)
    h = jnp.maximum(h + b1_ref[...], 0.0)                       # bias + ReLU in f32
    y = jnp.dot(h.astype(w2_ref.dtype), w2_ref[...],            # bf16 into MXU again
                preferred_element_type=jnp.float32)
    o_ref[...] = y + b2_ref[...]                                # f32 output, no cast


def toy_mlp(x, w1, b1, w2, b2, *, tb: int = 512):
    """y = relu(x @ w1 + b1) @ w2 + b2, weights stored [in, out]."""
    B, in_f = x.shape
    out_f = w2.shape[1]

    # Cast MXU operands to bf16 once (halves HBM traffic for the dominant x stream).
    x_bf = x.astype(jnp.bfloat16)
    w1_bf = w1.astype(jnp.bfloat16)
    w2_bf = w2.astype(jnp.bfloat16)
    b1_f = b1.astype(jnp.float32)
    b2_f = b2.astype(jnp.float32)

    # Batch tile: sublane-aligned (multiple of 8), <= tb, pad B up to a multiple.
    tb = max(8, min(tb, _round_up(B, 8)))
    Bp = _round_up(B, tb)
    if Bp != B:
        x_bf = jnp.pad(x_bf, ((0, Bp - B), (0, 0)))

    y = pl.pallas_call(
        toy_mlp_kernel,
        out_shape=jax.ShapeDtypeStruct((Bp, out_f), jnp.float32),
        grid_spec=pl.GridSpec(
            grid=(Bp // tb,),
            in_specs=[
                pl.BlockSpec((tb, in_f), lambda i: (i, 0)),      # x: tiled over batch
                pl.BlockSpec(w1_bf.shape, lambda i: (0, 0)),     # weights stay resident
                pl.BlockSpec(b1_f.shape, lambda i: (0, 0)),
                pl.BlockSpec(w2_bf.shape, lambda i: (0, 0)),
                pl.BlockSpec(b2_f.shape, lambda i: (0, 0)),
            ],
            out_specs=pl.BlockSpec((tb, out_f), lambda i: (i, 0)),
        ),
        compiler_params=pltpu.CompilerParams(
            dimension_semantics=("parallel",),                   # batch is independent
        ),
    )(x_bf, w1_bf, b1_f, w2_bf, b2_f)

    return y[:B] if Bp != B else y


def init_params(key):
    # Deterministic init mimicking nn.Linear's U(-1/sqrt(fan_in), 1/sqrt(fan_in)).
    k1, k2, k3, k4 = jax.random.split(key, 4)
    bound1 = 1.0 / jnp.sqrt(10.0)
    bound2 = 1.0 / jnp.sqrt(10.0)
    w1 = jax.random.uniform(k1, (10, 10), jnp.float32, -bound1, bound1)  # [in, out]
    b1 = jax.random.uniform(k2, (1, 10), jnp.float32, -bound1, bound1)
    w2 = jax.random.uniform(k3, (10, 5), jnp.float32, -bound2, bound2)   # [in, out]
    b2 = jax.random.uniform(k4, (1, 5), jnp.float32, -bound2, bound2)
    return w1, b1, w2, b2


if __name__ == "__main__":
    key = jax.random.PRNGKey(0)
    kx, kp = jax.random.split(key)
    B = 8
    x = jax.random.normal(kx, (B, 10), jnp.float32)
    w1, b1, w2, b2 = init_params(kp)

    y = toy_mlp(x, w1, b1, w2, b2)
    jax.block_until_ready(y)
    assert y.shape == (B, 5)

    # Reference 1: same bf16-operand / f32-accumulate recipe (tight tolerance).
    x_bf = x.astype(jnp.bfloat16)
    h_ref = jnp.maximum(
        jnp.dot(x_bf, w1.astype(jnp.bfloat16), preferred_element_type=jnp.float32) + b1,
        0.0,
    )
    y_ref = (
        jnp.dot(h_ref.astype(jnp.bfloat16), w2.astype(jnp.bfloat16),
                preferred_element_type=jnp.float32)
        + b2
    )
    assert jnp.allclose(y, y_ref, atol=1e-4, rtol=1e-4)

    # Reference 2: pure f32 math (loose tolerance covers bf16 rounding).
    y_f32 = jnp.maximum(x @ w1 + b1, 0.0) @ w2 + b2
    assert jnp.allclose(y, y_f32, atol=5e-2, rtol=5e-2)

    print("KERNEL_OK")
</pallas_src>

<mosaic_0001>
module attributes {stable_mosaic.version = 11 : i64} {
  func.func @toy_mlp_kernel(%arg0: i32, %arg1: memref<8x10xbf16, #tpu.memory_space<vmem>>, %arg2: memref<10x10xbf16, #tpu.memory_space<vmem>>, %arg3: memref<1x10xf32, #tpu.memory_space<vmem>>, %arg4: memref<10x5xbf16, #tpu.memory_space<vmem>>, %arg5: memref<1x5xf32, #tpu.memory_space<vmem>>, %arg6: memref<8x5xf32, #tpu.memory_space<vmem>>) attributes {dimension_semantics = [#tpu.dimension_semantics<parallel>], iteration_bounds = array<i64: 1>, scalar_prefetch = 0 : i64, scratch_operands = 0 : i64, tpu.core_type = #tpu.core_type<tc>, window_params = [{transform_indices = @transform_0, window_bounds = array<i64: 8, 10>}, {pipeline_mode = #tpu.pipeline_mode<synchronous>, transform_indices = @transform_1, window_bounds = array<i64: 10, 10>}, {pipeline_mode = #tpu.pipeline_mode<synchronous>, transform_indices = @transform_2, window_bounds = array<i64: 1, 10>}, {pipeline_mode = #tpu.pipeline_mode<synchronous>, transform_indices = @transform_3, window_bounds = array<i64: 10, 5>}, {pipeline_mode = #tpu.pipeline_mode<synchronous>, transform_indices = @transform_4, window_bounds = array<i64: 1, 5>}, {transform_indices = @transform_5, window_bounds = array<i64: 8, 5>}]} {
    %c0 = arith.constant 0 : index
    %c0_0 = arith.constant 0 : index
    %0 = vector.load %arg1[%c0, %c0_0] : memref<8x10xbf16, #tpu.memory_space<vmem>>, vector<8x10xbf16>
    %c0_1 = arith.constant 0 : index
    %c0_2 = arith.constant 0 : index
    %1 = vector.load %arg2[%c0_1, %c0_2] : memref<10x10xbf16, #tpu.memory_space<vmem>>, vector<10x10xbf16>
    %cst = arith.constant dense<0.000000e+00> : vector<8x10xf32>
    %2 = tpu.matmul %0, %1, %cst {dimension_numbers = #tpu.dot_dimension_numbers<[1], [0], [0], [1], [0, 0, 1, 1], [], []>} : vector<8x10xbf16>, vector<10x10xbf16>, vector<8x10xf32> -> vector<8x10xf32>
    %c0_3 = arith.constant 0 : index
    %c0_4 = arith.constant 0 : index
    %3 = vector.load %arg3[%c0_3, %c0_4] : memref<1x10xf32, #tpu.memory_space<vmem>>, vector<1x10xf32>
    %4 = vector.broadcast %3 : vector<1x10xf32> to vector<8x10xf32>
    %5 = arith.addf %2, %4 : vector<8x10xf32>
    %cst_5 = arith.constant 0.000000e+00 : f32
    %6 = vector.broadcast %cst_5 : f32 to vector<8x10xf32>
    %7 = arith.maximumf %5, %6 : vector<8x10xf32>
    %8 = arith.truncf %7 : vector<8x10xf32> to vector<8x10xbf16>
    %c0_6 = arith.constant 0 : index
    %c0_7 = arith.constant 0 : index
    %9 = vector.load %arg4[%c0_6, %c0_7] : memref<10x5xbf16, #tpu.memory_space<vmem>>, vector<10x5xbf16>
    %cst_8 = arith.constant dense<0.000000e+00> : vector<8x5xf32>
    %10 = tpu.matmul %8, %9, %cst_8 {dimension_numbers = #tpu.dot_dimension_numbers<[1], [0], [0], [1], [0, 0, 1, 1], [], []>} : vector<8x10xbf16>, vector<10x5xbf16>, vector<8x5xf32> -> vector<8x5xf32>
    %c0_9 = arith.constant 0 : index
    %c0_10 = arith.constant 0 : index
    %11 = vector.load %arg5[%c0_9, %c0_10] : memref<1x5xf32, #tpu.memory_space<vmem>>, vector<1x5xf32>
    %12 = vector.broadcast %11 : vector<1x5xf32> to vector<8x5xf32>
    %13 = arith.addf %10, %12 : vector<8x5xf32>
    %c0_11 = arith.constant 0 : index
    %c0_12 = arith.constant 0 : index
    %14 = vector.load %arg6[%c0_11, %c0_12] : memref<8x5xf32, #tpu.memory_space<vmem>>, vector<8x5xf32>
    tpu.vector_store %arg6[%c0_11, %c0_12], %13 {strides = array<i32>} : memref<8x5xf32, #tpu.memory_space<vmem>>, vector<8x5xf32>,
    return
  }
  func.func @transform_0(%arg0: i32) -> (i32, i32) {
    %c0_i32 = arith.constant 0 : i32
    %c0_i32_0 = arith.constant 0 : i32
    return %arg0, %c0_i32 : i32, i32
  }
  func.func @transform_1(%arg0: i32) -> (i32, i32) {
    %c0_i32 = arith.constant 0 : i32
    %c0_i32_0 = arith.constant 0 : i32
    %c0_i32_1 = arith.constant 0 : i32
    return %c0_i32, %c0_i32_0 : i32, i32
  }
  func.func @transform_2(%arg0: i32) -> (i32, i32) {
    %c0_i32 = arith.constant 0 : i32
    %c0_i32_0 = arith.constant 0 : i32
    %c0_i32_1 = arith.constant 0 : i32
    return %c0_i32, %c0_i32_0 : i32, i32
  }
  func.func @transform_3(%arg0: i32) -> (i32, i32) {
    %c0_i32 = arith.constant 0 : i32
    %c0_i32_0 = arith.constant 0 : i32
    %c0_i32_1 = arith.constant 0 : i32
    return %c0_i32, %c0_i32_0 : i32, i32
  }
  func.func @transform_4(%arg0: i32) -> (i32, i32) {
    %c0_i32 = arith.constant 0 : i32
    %c0_i32_0 = arith.constant 0 : i32
    %c0_i32_1 = arith.constant 0 : i32
    return %c0_i32, %c0_i32_0 : i32, i32
  }
  func.func @transform_5(%arg0: i32) -> (i32, i32) {
    %c0_i32 = arith.constant 0 : i32
    %c0_i32_0 = arith.constant 0 : i32
    return %arg0, %c0_i32 : i32, i32
  }
}

</mosaic_0001>

<bundles_post_ra>
// kernel: tpu_custom_call.1
= control target key start
LH: loop header
LB: loop body
LE: loop exit
PB: predicated region body
PF: predicated region fallthrough
CT: control target
= control target key end

     0   :  { %vm38_vm0 = vcmask 1044480   ;;  %s201_s0 = inlined_call_operand.vmem [shape: bf16[8,10], index: 0, kind: input, shape index: {}]   ;;  %s202_s1 = inlined_call_operand.vmem [shape: bf16[10,10], index: 1, kind: input, shape index: {}]   ;;  %s203_s2 = inlined_call_operand.vmem [shape: f32[1,10], index: 2, kind: input, shape index: {}]   ;;  %s204_s3 = inlined_call_operand.vmem [shape: bf16[10,5], index: 3, kind: input, shape index: {}]   ;;  %s205_s4 = inlined_call_operand.vmem [shape: f32[1,5], index: 4, kind: input, shape index: {}]   ;;  %s206_s5 = inlined_call_operand.hbm [shape: f32[8,5], index: 5, kind: output, shape index: {}]  }
   0x1   :  { %v107_v0 = vld [vmem:[%s202_s1] sm:$0xf]  ;;  %v115_v1 = vld [vmem:[%s202_s1] sm:$0x10] }
   0x2   :  { %v108_v2 = vor.u32 %v115_v1, %v107_v0 }
   0x3   :  { %10 = vsyncpa [#allocation3], 0  ;;  %v22_v4 = vld [vmem:[%s201_s0] sm:$0xf]  ;;  %vm34_vm1 = vcmask 80896   ;;  %s146_s30 = smov [#allocation2]  }
   0x4   :  { %v40_v3 = vsel %vm38_vm0, %v108_v2, 0  ;;  %v112_v5 = vld [vmem:[%s204_s3] sm:$0xf]  ;;  %v116_v6 = vld [vmem:[%s204_s3] sm:$0x10]  ;;  %s94_s6 = sshll.u32 %s146_s30, 4  ;;  %s95_s6 = int_to_ptr.vmem [resolvable:$true] %s94_s6 }
   0x5   :  { %49 = vmatpush.bf16.msra.mxu0 %v40_v3  ;;  %v113_v7 = vor.u32 %v116_v6, %v112_v5  ;;  %v118_v9 = vld [vmem:[%s203_s2] ss:$0 sm:$0xff]  ;;  %s96_s8 = sshll.u32 %s206_s5, 4  ;;  %vm87_vm2 = vcmask 39936   ;;  %s97_s8 = int_to_ptr.hbm [resolvable:$true] %s96_s8 }
   0x6   :  { %v119_v15 = vld [vmem:[%s205_s4] ss:$0 sm:$0xff] }
   0x7   :  { %v72_v8 = vsel %vm38_vm0, %v113_v7, 0 }
   0x8   :  { %109 = vmatmul.msk.bf16.vlgmr.msra.gmra.mxu0 %vm34_vm1, %v22_v4  ;;  %81 = vmatpush.bf16.msra.mxu1 %v72_v8 }
  0x85   :  { %v51_v10 = vpop.f32.mrf.mxu0 }
  0x86   :  { %v52_v11 = vadd.f32 %v118_v9, %v51_v10 }
  0x88   :  { %v55_v12 = vmax.f32 %v52_v11, 0.0 }
  0x8a   :  { %v56_v13 = vpack.c.bf16 %v55_v12, %v55_v12 }
  0x8c   :  { %114 = vmatmul.msk.bf16.vlgmr.msra.gmra.mxu1 %vm34_vm1, %v56_v13 }
  0x8d   :  { %v53_v14 = vpop.f32.mrf.mxu0 }
 0x109   :  { %v83_v16 = vpop.f32.mrf.mxu1 }
 0x10a   :  { %v84_v17 = vadd.f32 %v119_v15, %v83_v16 }
 0x10c   :  { %88 = vst.msk [vmem:[#allocation2] sm:$0xff] %vm87_vm2, %v84_v17 }
 0x10d   :  { %99 = dma.vmem_to_hbm [thread:$0]  %s95_s6, 128, %s97_s8, [#allocation3]  }
 0x111   :  { %v85_v18 = vpop.f32.mrf.mxu1 }
 0x112   :  { %144 = dma.done.wait [#allocation3], 128  }
 0x113   :  { %145 = vsyncadd [#allocation3], 4294967168 }
 0x114   :  { %104 = vsyncpa [#allocation3], 1 }

</bundles_post_ra>
